<compile_context>
chip_gen: v7x
topology: tpu7x:2x2x1
jax: 0.10.0
libtpu: 0.0.40
codegen_flags: <defaults>
</compile_context>

<pallas_src>
import functools
import math

import jax
import jax.numpy as jnp
from jax.experimental import pallas as pl
from jax.experimental.pallas import tpu as pltpu

_LN_EPS = 1e-5  # PyTorch nn.LayerNorm default


def _layer_norm(t, gamma, beta):
    mu = jnp.mean(t, axis=-1, keepdims=True)
    var = jnp.mean(jnp.square(t - mu), axis=-1, keepdims=True)
    return (t - mu) * jax.lax.rsqrt(var + _LN_EPS) * gamma + beta


def _erf(x):
    # Abramowitz & Stegun 7.1.26 (|err| < 1.5e-7): exp/mul/add only, so it
    # lowers on the VPU/EUP everywhere (a direct lax.erf lowering is not
    # guaranteed in Mosaic).
    a1, a2, a3, a4, a5 = (0.254829592, -0.284496736, 1.421413741,
                          -1.453152027, 1.061405429)
    p = 0.3275911
    sign = jnp.where(x >= 0.0, 1.0, -1.0)
    z = jnp.abs(x)
    t = 1.0 / (1.0 + p * z)
    poly = ((((a5 * t + a4) * t + a3) * t + a2) * t + a1) * t
    return sign * (1.0 - poly * jnp.exp(-z * z))


def _gelu_exact(x):
    # PyTorch nn.GELU() default = exact erf-based GELU.
    return 0.5 * x * (1.0 + _erf(x * (1.0 / math.sqrt(2.0))))


def _cross_attn_kernel(x_ref, c_ref, w_ref, b_ref, o_ref, *, num_heads):
    """One (batch, query-tile) grid step of the fused CrossAttentionBlock.

    x_ref: (1, Tq, D)  queries, seq-major, embed_dim on lanes
    c_ref: (1, Sc, D)  full context for this batch sample
    w_ref: (6, D, D)   [Wq, Wk, Wv, Wo, W1, W2]
    b_ref: (10, D)     [ln_g, ln_b, bq, bk, bv, bo, ln2_g, ln2_b, b1, b2]
    o_ref: (1, Tq, D)
    """
    f32 = jnp.float32
    x = x_ref[0].astype(f32)        # (Tq, D)
    c = c_ref[0].astype(f32)        # (Sc, D)
    ws = w_ref[...].astype(f32)     # (6, D, D)
    bs = b_ref[...].astype(f32)     # (10, D)

    D = x.shape[-1]
    dh = D // num_heads
    scale = 1.0 / math.sqrt(dh)

    # Shared pre-attention LayerNorm (same affine params for x and c).
    x_ln = _layer_norm(x, bs[0], bs[1])
    c_ln = _layer_norm(c, bs[0], bs[1])

    # QKV projections (f32 accumulation on the MXU).
    q = jnp.dot(x_ln, ws[0], preferred_element_type=f32) + bs[2]
    k = jnp.dot(c_ln, ws[1], preferred_element_type=f32) + bs[3]
    v = jnp.dot(c_ln, ws[2], preferred_element_type=f32) + bs[4]

    # Per-head scaled dot-product attention (static head loop; heads are tiny).
    heads = []
    for h in range(num_heads):
        sl = slice(h * dh, (h + 1) * dh)
        qh, kh, vh = q[:, sl], k[:, sl], v[:, sl]
        s = jnp.dot(qh, kh.T, preferred_element_type=f32) * scale   # (Tq, Sc)
        s = s - jnp.max(s, axis=-1, keepdims=True)
        p = jnp.exp(s)
        p = p / jnp.sum(p, axis=-1, keepdims=True)
        heads.append(jnp.dot(p, vh, preferred_element_type=f32))
    attn = jnp.concatenate(heads, axis=-1)                          # (Tq, D)
    attn = jnp.dot(attn, ws[3], preferred_element_type=f32) + bs[5]

    # Residual 1.
    h1 = attn + x_ln

    # Feed-forward: LN2 -> Linear -> GELU -> Linear, residual 2.
    f = _layer_norm(h1, bs[6], bs[7])
    f = jnp.dot(f, ws[4], preferred_element_type=f32) + bs[8]
    f = _gelu_exact(f)
    f = jnp.dot(f, ws[5], preferred_element_type=f32) + bs[9]

    o_ref[0] = (f + h1).astype(o_ref.dtype)


def cross_attention_block(x, c, params, *, num_heads, q_tile=256):
    """x: (B, D, Sx), c: (B, D, Sc) -> (B, D, Sx).  Matches the PyTorch module."""
    B, D, Sx = x.shape
    Bc, Dc, Sc = c.shape
    assert (B, D) == (Bc, Dc) and D % num_heads == 0

    # Layout plumbing stays in the wrapper: embed_dim on lanes, seq on sublanes.
    xt = jnp.transpose(x, (0, 2, 1))          # (B, Sx, D)
    ct = jnp.transpose(c, (0, 2, 1))          # (B, Sc, D)

    w_pack = jnp.stack([params["wq"], params["wk"], params["wv"],
                        params["wo"], params["w1"], params["w2"]])    # (6, D, D)
    b_pack = jnp.stack([params["ln_g"], params["ln_b"],
                        params["bq"], params["bk"], params["bv"], params["bo"],
                        params["ln2_g"], params["ln2_b"],
                        params["b1"], params["b2"]])                  # (10, D)

    # Query tile: full seq for short sequences; cap the tile for long ones so
    # the per-step working set stays well inside v7x's smaller VMEM.
    tq = Sx if Sx <= q_tile else q_tile
    grid = (B, pl.cdiv(Sx, tq))

    kernel = functools.partial(_cross_attn_kernel, num_heads=num_heads)

    out = pl.pallas_call(
        kernel,
        out_shape=jax.ShapeDtypeStruct((B, Sx, D), x.dtype),
        grid_spec=pltpu.PrefetchScalarGridSpec(
            num_scalar_prefetch=0,
            grid=grid,
            in_specs=[
                pl.BlockSpec((1, tq, D), lambda b, i: (b, i, 0)),   # query tile
                pl.BlockSpec((1, Sc, D), lambda b, i: (b, 0, 0)),   # full context
                pl.BlockSpec((6, D, D), lambda b, i: (0, 0, 0)),    # weights (VMEM-resident)
                pl.BlockSpec((10, D), lambda b, i: (0, 0)),         # biases / LN affine
            ],
            out_specs=pl.BlockSpec((1, tq, D), lambda b, i: (b, i, 0)),
        ),
        compiler_params=pltpu.CompilerParams(
            # All grid steps are independent -> shardable across v7x's 2 TCs.
            dimension_semantics=("parallel", "parallel"),
        ),
    )(xt, ct, w_pack, b_pack)

    return jnp.transpose(out, (0, 2, 1))      # back to (B, D, Sx)


def _reference(x, c, params, *, num_heads):
    """Pure-JAX reference mirroring the PyTorch module."""
    xt = jnp.transpose(x, (0, 2, 1)).astype(jnp.float32)
    ct = jnp.transpose(c, (0, 2, 1)).astype(jnp.float32)
    x_ln = _layer_norm(xt, params["ln_g"], params["ln_b"])
    c_ln = _layer_norm(ct, params["ln_g"], params["ln_b"])
    B, Sx, D = x_ln.shape
    Sc = c_ln.shape[1]
    dh = D // num_heads
    q = (x_ln @ params["wq"] + params["bq"]).reshape(B, Sx, num_heads, dh)
    k = (c_ln @ params["wk"] + params["bk"]).reshape(B, Sc, num_heads, dh)
    v = (c_ln @ params["wv"] + params["bv"]).reshape(B, Sc, num_heads, dh)
    s = jnp.einsum("bqhd,bkhd->bhqk", q, k) / math.sqrt(dh)
    p = jax.nn.softmax(s, axis=-1)
    a = jnp.einsum("bhqk,bkhd->bqhd", p, v).reshape(B, Sx, D)
    a = a @ params["wo"] + params["bo"]
    h1 = a + x_ln
    f = _layer_norm(h1, params["ln2_g"], params["ln2_b"])
    f = jax.nn.gelu(f @ params["w1"] + params["b1"], approximate=False)
    f = f @ params["w2"] + params["b2"]
    return jnp.transpose(f + h1, (0, 2, 1))


if __name__ == "__main__":
    B, D, Sx, Sc, H = 2, 32, 8, 8, 4   # batch, embed_dim, seq_q, seq_kv, heads
    key = jax.random.PRNGKey(0)
    ks = list(jax.random.split(key, 18))

    def init(k, shape, s=0.08):
        return (s * jax.random.normal(k, shape)).astype(jnp.float32)

    x = jax.random.normal(ks[0], (B, D, Sx), dtype=jnp.float32)
    c = jax.random.normal(ks[1], (B, D, Sc), dtype=jnp.float32)

    params = {
        "ln_g": 1.0 + init(ks[2], (D,)),  "ln_b": init(ks[3], (D,)),
        "wq": init(ks[4], (D, D)),  "bq": init(ks[5], (D,)),
        "wk": init(ks[6], (D, D)),  "bk": init(ks[7], (D,)),
        "wv": init(ks[8], (D, D)),  "bv": init(ks[9], (D,)),
        "wo": init(ks[10], (D, D)), "bo": init(ks[11], (D,)),
        "ln2_g": 1.0 + init(ks[12], (D,)), "ln2_b": init(ks[13], (D,)),
        "w1": init(ks[14], (D, D)), "b1": init(ks[15], (D,)),
        "w2": init(ks[16], (D, D)), "b2": init(ks[17], (D,)),
    }

    out = cross_attention_block(x, c, params, num_heads=H)
    out = jax.block_until_ready(out)
    assert out.shape == (B, D, Sx), out.shape
    assert bool(jnp.all(jnp.isfinite(out)))

    ref = _reference(x, c, params, num_heads=H)
    err = float(jnp.max(jnp.abs(out - ref)))
    assert err < 5e-4, f"mismatch vs pure-JAX reference: max abs err {err}"

    print("KERNEL_OK")
</pallas_src>

<mosaic_0001>
module attributes {stable_mosaic.version = 11 : i64} {
  func.func @_cross_attn_kernel(%arg0: i32, %arg1: i32, %arg2: memref<1x8x32xf32, #tpu.memory_space<vmem>>, %arg3: memref<1x8x32xf32, #tpu.memory_space<vmem>>, %arg4: memref<6x32x32xf32, #tpu.memory_space<vmem>>, %arg5: memref<10x32xf32, #tpu.memory_space<vmem>>, %arg6: memref<1x8x32xf32, #tpu.memory_space<vmem>>) attributes {dimension_semantics = [#tpu.dimension_semantics<parallel>, #tpu.dimension_semantics<parallel>], iteration_bounds = array<i64: 2, 1>, scalar_prefetch = 0 : i64, scratch_operands = 0 : i64, tpu.core_type = #tpu.core_type<tc>, window_params = [{transform_indices = @transform_0, window_bounds = array<i64: 1, 8, 32>}, {transform_indices = @transform_1, window_bounds = array<i64: 1, 8, 32>}, {pipeline_mode = #tpu.pipeline_mode<synchronous>, transform_indices = @transform_2, window_bounds = array<i64: 6, 32, 32>}, {pipeline_mode = #tpu.pipeline_mode<synchronous>, transform_indices = @transform_3, window_bounds = array<i64: 10, 32>}, {transform_indices = @transform_4, window_bounds = array<i64: 1, 8, 32>}]} {
    %c0 = arith.constant 0 : index
    %c0_0 = arith.constant 0 : index
    %c0_1 = arith.constant 0 : index
    %0 = vector.load %arg2[%c0, %c0_0, %c0_1] : memref<1x8x32xf32, #tpu.memory_space<vmem>>, vector<1x8x32xf32>
    %1 = vector.shape_cast %0 : vector<1x8x32xf32> to vector<8x32xf32>
    %c0_2 = arith.constant 0 : index
    %c0_3 = arith.constant 0 : index
    %c0_4 = arith.constant 0 : index
    %2 = vector.load %arg3[%c0_2, %c0_3, %c0_4] : memref<1x8x32xf32, #tpu.memory_space<vmem>>, vector<1x8x32xf32>
    %3 = vector.shape_cast %2 : vector<1x8x32xf32> to vector<8x32xf32>
    %c0_5 = arith.constant 0 : index
    %c0_6 = arith.constant 0 : index
    %c0_7 = arith.constant 0 : index
    %4 = vector.load %arg4[%c0_5, %c0_6, %c0_7] : memref<6x32x32xf32, #tpu.memory_space<vmem>>, vector<6x32x32xf32>
    %c0_8 = arith.constant 0 : index
    %c0_9 = arith.constant 0 : index
    %5 = vector.load %arg5[%c0_8, %c0_9] : memref<10x32xf32, #tpu.memory_space<vmem>>, vector<10x32xf32>
    %6 = vector.extract_strided_slice %5 {offsets = [0, 0], sizes = [1, 32], strides = [1, 1]} : vector<10x32xf32> to vector<1x32xf32>
    %7 = vector.shape_cast %6 : vector<1x32xf32> to vector<32xf32>
    %8 = vector.extract_strided_slice %5 {offsets = [1, 0], sizes = [1, 32], strides = [1, 1]} : vector<10x32xf32> to vector<1x32xf32>
    %9 = vector.shape_cast %8 : vector<1x32xf32> to vector<32xf32>
    %cst = arith.constant dense<0.000000e+00> : vector<8xf32>
    %10 = vector.multi_reduction <add>, %1, %cst [1] : vector<8x32xf32> to vector<8xf32>
    %11 = vector.shape_cast %10 : vector<8xf32> to vector<8x1xf32>
    %cst_10 = arith.constant 3.200000e+01 : f32
    %12 = vector.broadcast %cst_10 : f32 to vector<8x1xf32>
    %13 = arith.divf %11, %12 : vector<8x1xf32>
    %14 = vector.broadcast %13 : vector<8x1xf32> to vector<8x32xf32>
    %15 = arith.subf %1, %14 : vector<8x32xf32>
    %16 = arith.mulf %15, %15 : vector<8x32xf32>
    %cst_11 = arith.constant dense<0.000000e+00> : vector<8xf32>
    %17 = vector.multi_reduction <add>, %16, %cst_11 [1] : vector<8x32xf32> to vector<8xf32>
    %18 = vector.shape_cast %17 : vector<8xf32> to vector<8x1xf32>
    %cst_12 = arith.constant 3.200000e+01 : f32
    %19 = vector.broadcast %cst_12 : f32 to vector<8x1xf32>
    %20 = arith.divf %18, %19 : vector<8x1xf32>
    %21 = vector.broadcast %13 : vector<8x1xf32> to vector<8x32xf32>
    %22 = arith.subf %1, %21 : vector<8x32xf32>
    %cst_13 = arith.constant 9.99999974E-6 : f32
    %23 = vector.broadcast %cst_13 : f32 to vector<8x1xf32>
    %24 = arith.addf %20, %23 : vector<8x1xf32>
    %25 = math.rsqrt %24 : vector<8x1xf32>
    %26 = vector.broadcast %25 : vector<8x1xf32> to vector<8x32xf32>
    %27 = arith.mulf %22, %26 : vector<8x32xf32>
    %28 = vector.shape_cast %7 : vector<32xf32> to vector<1x32xf32>
    %29 = vector.broadcast %28 : vector<1x32xf32> to vector<8x32xf32>
    %30 = arith.mulf %27, %29 : vector<8x32xf32>
    %31 = vector.shape_cast %9 : vector<32xf32> to vector<1x32xf32>
    %32 = vector.broadcast %31 : vector<1x32xf32> to vector<8x32xf32>
    %33 = arith.addf %30, %32 : vector<8x32xf32>
    %34 = vector.extract_strided_slice %5 {offsets = [0, 0], sizes = [1, 32], strides = [1, 1]} : vector<10x32xf32> to vector<1x32xf32>
    %35 = vector.shape_cast %34 : vector<1x32xf32> to vector<32xf32>
    %36 = vector.extract_strided_slice %5 {offsets = [1, 0], sizes = [1, 32], strides = [1, 1]} : vector<10x32xf32> to vector<1x32xf32>
    %37 = vector.shape_cast %36 : vector<1x32xf32> to vector<32xf32>
    %cst_14 = arith.constant dense<0.000000e+00> : vector<8xf32>
    %38 = vector.multi_reduction <add>, %3, %cst_14 [1] : vector<8x32xf32> to vector<8xf32>
    %39 = vector.shape_cast %38 : vector<8xf32> to vector<8x1xf32>
    %cst_15 = arith.constant 3.200000e+01 : f32
    %40 = vector.broadcast %cst_15 : f32 to vector<8x1xf32>
    %41 = arith.divf %39, %40 : vector<8x1xf32>
    %42 = vector.broadcast %41 : vector<8x1xf32> to vector<8x32xf32>
    %43 = arith.subf %3, %42 : vector<8x32xf32>
    %44 = arith.mulf %43, %43 : vector<8x32xf32>
    %cst_16 = arith.constant dense<0.000000e+00> : vector<8xf32>
    %45 = vector.multi_reduction <add>, %44, %cst_16 [1] : vector<8x32xf32> to vector<8xf32>
    %46 = vector.shape_cast %45 : vector<8xf32> to vector<8x1xf32>
    %cst_17 = arith.constant 3.200000e+01 : f32
    %47 = vector.broadcast %cst_17 : f32 to vector<8x1xf32>
    %48 = arith.divf %46, %47 : vector<8x1xf32>
    %49 = vector.broadcast %41 : vector<8x1xf32> to vector<8x32xf32>
    %50 = arith.subf %3, %49 : vector<8x32xf32>
    %cst_18 = arith.constant 9.99999974E-6 : f32
    %51 = vector.broadcast %cst_18 : f32 to vector<8x1xf32>
    %52 = arith.addf %48, %51 : vector<8x1xf32>
    %53 = math.rsqrt %52 : vector<8x1xf32>
    %54 = vector.broadcast %53 : vector<8x1xf32> to vector<8x32xf32>
    %55 = arith.mulf %50, %54 : vector<8x32xf32>
    %56 = vector.shape_cast %35 : vector<32xf32> to vector<1x32xf32>
    %57 = vector.broadcast %56 : vector<1x32xf32> to vector<8x32xf32>
    %58 = arith.mulf %55, %57 : vector<8x32xf32>
    %59 = vector.shape_cast %37 : vector<32xf32> to vector<1x32xf32>
    %60 = vector.broadcast %59 : vector<1x32xf32> to vector<8x32xf32>
    %61 = arith.addf %58, %60 : vector<8x32xf32>
    %62 = vector.extract_strided_slice %4 {offsets = [0, 0, 0], sizes = [1, 32, 32], strides = [1, 1, 1]} : vector<6x32x32xf32> to vector<1x32x32xf32>
    %63 = vector.shape_cast %62 : vector<1x32x32xf32> to vector<32x32xf32>
    %cst_19 = arith.constant dense<0.000000e+00> : vector<8x32xf32>
    %64 = tpu.matmul %33, %63, %cst_19 {dimension_numbers = #tpu.dot_dimension_numbers<[1], [0], [0], [1], [0, 0, 1, 1], [], []>} : vector<8x32xf32>, vector<32x32xf32>, vector<8x32xf32> -> vector<8x32xf32>
    %65 = vector.extract_strided_slice %5 {offsets = [2, 0], sizes = [1, 32], strides = [1, 1]} : vector<10x32xf32> to vector<1x32xf32>
    %66 = vector.shape_cast %65 : vector<1x32xf32> to vector<32xf32>
    %67 = vector.shape_cast %66 : vector<32xf32> to vector<1x32xf32>
    %68 = vector.broadcast %67 : vector<1x32xf32> to vector<8x32xf32>
    %69 = arith.addf %64, %68 : vector<8x32xf32>
    %70 = vector.extract_strided_slice %4 {offsets = [1, 0, 0], sizes = [1, 32, 32], strides = [1, 1, 1]} : vector<6x32x32xf32> to vector<1x32x32xf32>
    %71 = vector.shape_cast %70 : vector<1x32x32xf32> to vector<32x32xf32>
    %cst_20 = arith.constant dense<0.000000e+00> : vector<8x32xf32>
    %72 = tpu.matmul %61, %71, %cst_20 {dimension_numbers = #tpu.dot_dimension_numbers<[1], [0], [0], [1], [0, 0, 1, 1], [], []>} : vector<8x32xf32>, vector<32x32xf32>, vector<8x32xf32> -> vector<8x32xf32>
    %73 = vector.extract_strided_slice %5 {offsets = [3, 0], sizes = [1, 32], strides = [1, 1]} : vector<10x32xf32> to vector<1x32xf32>
    %74 = vector.shape_cast %73 : vector<1x32xf32> to vector<32xf32>
    %75 = vector.shape_cast %74 : vector<32xf32> to vector<1x32xf32>
    %76 = vector.broadcast %75 : vector<1x32xf32> to vector<8x32xf32>
    %77 = arith.addf %72, %76 : vector<8x32xf32>
    %78 = vector.extract_strided_slice %4 {offsets = [2, 0, 0], sizes = [1, 32, 32], strides = [1, 1, 1]} : vector<6x32x32xf32> to vector<1x32x32xf32>
    %79 = vector.shape_cast %78 : vector<1x32x32xf32> to vector<32x32xf32>
    %cst_21 = arith.constant dense<0.000000e+00> : vector<8x32xf32>
    %80 = tpu.matmul %61, %79, %cst_21 {dimension_numbers = #tpu.dot_dimension_numbers<[1], [0], [0], [1], [0, 0, 1, 1], [], []>} : vector<8x32xf32>, vector<32x32xf32>, vector<8x32xf32> -> vector<8x32xf32>
    %81 = vector.extract_strided_slice %5 {offsets = [4, 0], sizes = [1, 32], strides = [1, 1]} : vector<10x32xf32> to vector<1x32xf32>
    %82 = vector.shape_cast %81 : vector<1x32xf32> to vector<32xf32>
    %83 = vector.shape_cast %82 : vector<32xf32> to vector<1x32xf32>
    %84 = vector.broadcast %83 : vector<1x32xf32> to vector<8x32xf32>
    %85 = arith.addf %80, %84 : vector<8x32xf32>
    %86 = vector.extract_strided_slice %69 {offsets = [0, 0], sizes = [8, 8], strides = [1, 1]} : vector<8x32xf32> to vector<8x8xf32>
    %87 = vector.extract_strided_slice %77 {offsets = [0, 0], sizes = [8, 8], strides = [1, 1]} : vector<8x32xf32> to vector<8x8xf32>
    %88 = vector.extract_strided_slice %85 {offsets = [0, 0], sizes = [8, 8], strides = [1, 1]} : vector<8x32xf32> to vector<8x8xf32>
    %89 = tpu.transpose %87, [1, 0] : vector<8x8xf32> -> vector<8x8xf32>
    %cst_22 = arith.constant dense<0.000000e+00> : vector<8x8xf32>
    %90 = tpu.matmul %86, %89, %cst_22 {dimension_numbers = #tpu.dot_dimension_numbers<[1], [0], [0], [1], [0, 0, 1, 1], [], []>} : vector<8x8xf32>, vector<8x8xf32>, vector<8x8xf32> -> vector<8x8xf32>
    %cst_23 = arith.constant 0.353553385 : f32
    %91 = vector.broadcast %cst_23 : f32 to vector<8x8xf32>
    %92 = arith.mulf %90, %91 : vector<8x8xf32>
    %cst_24 = arith.constant dense<0xFF800000> : vector<8xf32>
    %93 = vector.multi_reduction <maximumf>, %92, %cst_24 [1] : vector<8x8xf32> to vector<8xf32>
    %94 = vector.shape_cast %93 : vector<8xf32> to vector<8x1xf32>
    %95 = vector.broadcast %94 : vector<8x1xf32> to vector<8x8xf32>
    %96 = arith.subf %92, %95 : vector<8x8xf32>
    %97 = math.exp %96 : vector<8x8xf32>
    %cst_25 = arith.constant dense<0.000000e+00> : vector<8xf32>
    %98 = vector.multi_reduction <add>, %97, %cst_25 [1] : vector<8x8xf32> to vector<8xf32>
    %99 = vector.shape_cast %98 : vector<8xf32> to vector<8x1xf32>
    %100 = vector.broadcast %99 : vector<8x1xf32> to vector<8x8xf32>
    %101 = arith.divf %97, %100 : vector<8x8xf32>
    %cst_26 = arith.constant dense<0.000000e+00> : vector<8x8xf32>
    %102 = tpu.matmul %101, %88, %cst_26 {dimension_numbers = #tpu.dot_dimension_numbers<[1], [0], [0], [1], [0, 0, 1, 1], [], []>} : vector<8x8xf32>, vector<8x8xf32>, vector<8x8xf32> -> vector<8x8xf32>
    %103 = vector.extract_strided_slice %69 {offsets = [0, 8], sizes = [8, 8], strides = [1, 1]} : vector<8x32xf32> to vector<8x8xf32>
    %104 = vector.extract_strided_slice %77 {offsets = [0, 8], sizes = [8, 8], strides = [1, 1]} : vector<8x32xf32> to vector<8x8xf32>
    %105 = vector.extract_strided_slice %85 {offsets = [0, 8], sizes = [8, 8], strides = [1, 1]} : vector<8x32xf32> to vector<8x8xf32>
    %106 = tpu.transpose %104, [1, 0] : vector<8x8xf32> -> vector<8x8xf32>
    %cst_27 = arith.constant dense<0.000000e+00> : vector<8x8xf32>
    %107 = tpu.matmul %103, %106, %cst_27 {dimension_numbers = #tpu.dot_dimension_numbers<[1], [0], [0], [1], [0, 0, 1, 1], [], []>} : vector<8x8xf32>, vector<8x8xf32>, vector<8x8xf32> -> vector<8x8xf32>
    %cst_28 = arith.constant 0.353553385 : f32
    %108 = vector.broadcast %cst_28 : f32 to vector<8x8xf32>
    %109 = arith.mulf %107, %108 : vector<8x8xf32>
    %cst_29 = arith.constant dense<0xFF800000> : vector<8xf32>
    %110 = vector.multi_reduction <maximumf>, %109, %cst_29 [1] : vector<8x8xf32> to vector<8xf32>
    %111 = vector.shape_cast %110 : vector<8xf32> to vector<8x1xf32>
    %112 = vector.broadcast %111 : vector<8x1xf32> to vector<8x8xf32>
    %113 = arith.subf %109, %112 : vector<8x8xf32>
    %114 = math.exp %113 : vector<8x8xf32>
    %cst_30 = arith.constant dense<0.000000e+00> : vector<8xf32>
    %115 = vector.multi_reduction <add>, %114, %cst_30 [1] : vector<8x8xf32> to vector<8xf32>
    %116 = vector.shape_cast %115 : vector<8xf32> to vector<8x1xf32>
    %117 = vector.broadcast %116 : vector<8x1xf32> to vector<8x8xf32>
    %118 = arith.divf %114, %117 : vector<8x8xf32>
    %cst_31 = arith.constant dense<0.000000e+00> : vector<8x8xf32>
    %119 = tpu.matmul %118, %105, %cst_31 {dimension_numbers = #tpu.dot_dimension_numbers<[1], [0], [0], [1], [0, 0, 1, 1], [], []>} : vector<8x8xf32>, vector<8x8xf32>, vector<8x8xf32> -> vector<8x8xf32>
    %120 = vector.extract_strided_slice %69 {offsets = [0, 16], sizes = [8, 8], strides = [1, 1]} : vector<8x32xf32> to vector<8x8xf32>
    %121 = vector.extract_strided_slice %77 {offsets = [0, 16], sizes = [8, 8], strides = [1, 1]} : vector<8x32xf32> to vector<8x8xf32>
    %122 = vector.extract_strided_slice %85 {offsets = [0, 16], sizes = [8, 8], strides = [1, 1]} : vector<8x32xf32> to vector<8x8xf32>
    %123 = tpu.transpose %121, [1, 0] : vector<8x8xf32> -> vector<8x8xf32>
    %cst_32 = arith.constant dense<0.000000e+00> : vector<8x8xf32>
    %124 = tpu.matmul %120, %123, %cst_32 {dimension_numbers = #tpu.dot_dimension_numbers<[1], [0], [0], [1], [0, 0, 1, 1], [], []>} : vector<8x8xf32>, vector<8x8xf32>, vector<8x8xf32> -> vector<8x8xf32>
    %cst_33 = arith.constant 0.353553385 : f32
    %125 = vector.broadcast %cst_33 : f32 to vector<8x8xf32>
    %126 = arith.mulf %124, %125 : vector<8x8xf32>
    %cst_34 = arith.constant dense<0xFF800000> : vector<8xf32>
    %127 = vector.multi_reduction <maximumf>, %126, %cst_34 [1] : vector<8x8xf32> to vector<8xf32>
    %128 = vector.shape_cast %127 : vector<8xf32> to vector<8x1xf32>
    %129 = vector.broadcast %128 : vector<8x1xf32> to vector<8x8xf32>
    %130 = arith.subf %126, %129 : vector<8x8xf32>
    %131 = math.exp %130 : vector<8x8xf32>
    %cst_35 = arith.constant dense<0.000000e+00> : vector<8xf32>
    %132 = vector.multi_reduction <add>, %131, %cst_35 [1] : vector<8x8xf32> to vector<8xf32>
    %133 = vector.shape_cast %132 : vector<8xf32> to vector<8x1xf32>
    %134 = vector.broadcast %133 : vector<8x1xf32> to vector<8x8xf32>
    %135 = arith.divf %131, %134 : vector<8x8xf32>
    %cst_36 = arith.constant dense<0.000000e+00> : vector<8x8xf32>
    %136 = tpu.matmul %135, %122, %cst_36 {dimension_numbers = #tpu.dot_dimension_numbers<[1], [0], [0], [1], [0, 0, 1, 1], [], []>} : vector<8x8xf32>, vector<8x8xf32>, vector<8x8xf32> -> vector<8x8xf32>
    %137 = vector.extract_strided_slice %69 {offsets = [0, 24], sizes = [8, 8], strides = [1, 1]} : vector<8x32xf32> to vector<8x8xf32>
    %138 = vector.extract_strided_slice %77 {offsets = [0, 24], sizes = [8, 8], strides = [1, 1]} : vector<8x32xf32> to vector<8x8xf32>
    %139 = vector.extract_strided_slice %85 {offsets = [0, 24], sizes = [8, 8], strides = [1, 1]} : vector<8x32xf32> to vector<8x8xf32>
    %140 = tpu.transpose %138, [1, 0] : vector<8x8xf32> -> vector<8x8xf32>
    %cst_37 = arith.constant dense<0.000000e+00> : vector<8x8xf32>
    %141 = tpu.matmul %137, %140, %cst_37 {dimension_numbers = #tpu.dot_dimension_numbers<[1], [0], [0], [1], [0, 0, 1, 1], [], []>} : vector<8x8xf32>, vector<8x8xf32>, vector<8x8xf32> -> vector<8x8xf32>
    %cst_38 = arith.constant 0.353553385 : f32
    %142 = vector.broadcast %cst_38 : f32 to vector<8x8xf32>
    %143 = arith.mulf %141, %142 : vector<8x8xf32>
    %cst_39 = arith.constant dense<0xFF800000> : vector<8xf32>
    %144 = vector.multi_reduction <maximumf>, %143, %cst_39 [1] : vector<8x8xf32> to vector<8xf32>
    %145 = vector.shape_cast %144 : vector<8xf32> to vector<8x1xf32>
    %146 = vector.broadcast %145 : vector<8x1xf32> to vector<8x8xf32>
    %147 = arith.subf %143, %146 : vector<8x8xf32>
    %148 = math.exp %147 : vector<8x8xf32>
    %cst_40 = arith.constant dense<0.000000e+00> : vector<8xf32>
    %149 = vector.multi_reduction <add>, %148, %cst_40 [1] : vector<8x8xf32> to vector<8xf32>
    %150 = vector.shape_cast %149 : vector<8xf32> to vector<8x1xf32>
    %151 = vector.broadcast %150 : vector<8x1xf32> to vector<8x8xf32>
    %152 = arith.divf %148, %151 : vector<8x8xf32>
    %cst_41 = arith.constant dense<0.000000e+00> : vector<8x8xf32>
    %153 = tpu.matmul %152, %139, %cst_41 {dimension_numbers = #tpu.dot_dimension_numbers<[1], [0], [0], [1], [0, 0, 1, 1], [], []>} : vector<8x8xf32>, vector<8x8xf32>, vector<8x8xf32> -> vector<8x8xf32>
    %154 = tpu.concatenate %102, %119, %136, %153 in 1 : vector<8x8xf32>, vector<8x8xf32>, vector<8x8xf32>, vector<8x8xf32> -> vector<8x32xf32>
    %155 = vector.extract_strided_slice %4 {offsets = [3, 0, 0], sizes = [1, 32, 32], strides = [1, 1, 1]} : vector<6x32x32xf32> to vector<1x32x32xf32>
    %156 = vector.shape_cast %155 : vector<1x32x32xf32> to vector<32x32xf32>
    %cst_42 = arith.constant dense<0.000000e+00> : vector<8x32xf32>
    %157 = tpu.matmul %154, %156, %cst_42 {dimension_numbers = #tpu.dot_dimension_numbers<[1], [0], [0], [1], [0, 0, 1, 1], [], []>} : vector<8x32xf32>, vector<32x32xf32>, vector<8x32xf32> -> vector<8x32xf32>
    %158 = vector.extract_strided_slice %5 {offsets = [5, 0], sizes = [1, 32], strides = [1, 1]} : vector<10x32xf32> to vector<1x32xf32>
    %159 = vector.shape_cast %158 : vector<1x32xf32> to vector<32xf32>
    %160 = vector.shape_cast %159 : vector<32xf32> to vector<1x32xf32>
    %161 = vector.broadcast %160 : vector<1x32xf32> to vector<8x32xf32>
    %162 = arith.addf %157, %161 : vector<8x32xf32>
    %163 = arith.addf %162, %33 : vector<8x32xf32>
    %164 = vector.extract_strided_slice %5 {offsets = [6, 0], sizes = [1, 32], strides = [1, 1]} : vector<10x32xf32> to vector<1x32xf32>
    %165 = vector.shape_cast %164 : vector<1x32xf32> to vector<32xf32>
    %166 = vector.extract_strided_slice %5 {offsets = [7, 0], sizes = [1, 32], strides = [1, 1]} : vector<10x32xf32> to vector<1x32xf32>
    %167 = vector.shape_cast %166 : vector<1x32xf32> to vector<32xf32>
    %cst_43 = arith.constant dense<0.000000e+00> : vector<8xf32>
    %168 = vector.multi_reduction <add>, %163, %cst_43 [1] : vector<8x32xf32> to vector<8xf32>
    %169 = vector.shape_cast %168 : vector<8xf32> to vector<8x1xf32>
    %cst_44 = arith.constant 3.200000e+01 : f32
    %170 = vector.broadcast %cst_44 : f32 to vector<8x1xf32>
    %171 = arith.divf %169, %170 : vector<8x1xf32>
    %172 = vector.broadcast %171 : vector<8x1xf32> to vector<8x32xf32>
    %173 = arith.subf %163, %172 : vector<8x32xf32>
    %174 = arith.mulf %173, %173 : vector<8x32xf32>
    %cst_45 = arith.constant dense<0.000000e+00> : vector<8xf32>
    %175 = vector.multi_reduction <add>, %174, %cst_45 [1] : vector<8x32xf32> to vector<8xf32>
    %176 = vector.shape_cast %175 : vector<8xf32> to vector<8x1xf32>
    %cst_46 = arith.constant 3.200000e+01 : f32
    %177 = vector.broadcast %cst_46 : f32 to vector<8x1xf32>
    %178 = arith.divf %176, %177 : vector<8x1xf32>
    %179 = vector.broadcast %171 : vector<8x1xf32> to vector<8x32xf32>
    %180 = arith.subf %163, %179 : vector<8x32xf32>
    %cst_47 = arith.constant 9.99999974E-6 : f32
    %181 = vector.broadcast %cst_47 : f32 to vector<8x1xf32>
    %182 = arith.addf %178, %181 : vector<8x1xf32>
    %183 = math.rsqrt %182 : vector<8x1xf32>
    %184 = vector.broadcast %183 : vector<8x1xf32> to vector<8x32xf32>
    %185 = arith.mulf %180, %184 : vector<8x32xf32>
    %186 = vector.shape_cast %165 : vector<32xf32> to vector<1x32xf32>
    %187 = vector.broadcast %186 : vector<1x32xf32> to vector<8x32xf32>
    %188 = arith.mulf %185, %187 : vector<8x32xf32>
    %189 = vector.shape_cast %167 : vector<32xf32> to vector<1x32xf32>
    %190 = vector.broadcast %189 : vector<1x32xf32> to vector<8x32xf32>
    %191 = arith.addf %188, %190 : vector<8x32xf32>
    %192 = vector.extract_strided_slice %4 {offsets = [4, 0, 0], sizes = [1, 32, 32], strides = [1, 1, 1]} : vector<6x32x32xf32> to vector<1x32x32xf32>
    %193 = vector.shape_cast %192 : vector<1x32x32xf32> to vector<32x32xf32>
    %cst_48 = arith.constant dense<0.000000e+00> : vector<8x32xf32>
    %194 = tpu.matmul %191, %193, %cst_48 {dimension_numbers = #tpu.dot_dimension_numbers<[1], [0], [0], [1], [0, 0, 1, 1], [], []>} : vector<8x32xf32>, vector<32x32xf32>, vector<8x32xf32> -> vector<8x32xf32>
    %195 = vector.extract_strided_slice %5 {offsets = [8, 0], sizes = [1, 32], strides = [1, 1]} : vector<10x32xf32> to vector<1x32xf32>
    %196 = vector.shape_cast %195 : vector<1x32xf32> to vector<32xf32>
    %197 = vector.shape_cast %196 : vector<32xf32> to vector<1x32xf32>
    %198 = vector.broadcast %197 : vector<1x32xf32> to vector<8x32xf32>
    %199 = arith.addf %194, %198 : vector<8x32xf32>
    %cst_49 = arith.constant 5.000000e-01 : f32
    %200 = vector.broadcast %cst_49 : f32 to vector<8x32xf32>
    %201 = arith.mulf %200, %199 : vector<8x32xf32>
    %cst_50 = arith.constant 0.707106769 : f32
    %202 = vector.broadcast %cst_50 : f32 to vector<8x32xf32>
    %203 = arith.mulf %199, %202 : vector<8x32xf32>
    %cst_51 = arith.constant 0.000000e+00 : f32
    %204 = vector.broadcast %cst_51 : f32 to vector<8x32xf32>
    %205 = arith.cmpf oge, %203, %204 : vector<8x32xf32>
    %cst_52 = arith.constant 1.000000e+00 : f32
    %cst_53 = arith.constant -1.000000e+00 : f32
    %206 = vector.broadcast %cst_52 : f32 to vector<8x32xf32>
    %207 = vector.broadcast %cst_53 : f32 to vector<8x32xf32>
    %208 = arith.select %205, %206, %207 : vector<8x32xi1>, vector<8x32xf32>
    %209 = math.absf %203 : vector<8x32xf32>
    %cst_54 = arith.constant 0.327591091 : f32
    %210 = vector.broadcast %cst_54 : f32 to vector<8x32xf32>
    %211 = arith.mulf %210, %209 : vector<8x32xf32>
    %cst_55 = arith.constant 1.000000e+00 : f32
    %212 = vector.broadcast %cst_55 : f32 to vector<8x32xf32>
    %213 = arith.addf %212, %211 : vector<8x32xf32>
    %cst_56 = arith.constant 1.000000e+00 : f32
    %214 = vector.broadcast %cst_56 : f32 to vector<8x32xf32>
    %215 = arith.divf %214, %213 : vector<8x32xf32>
    %cst_57 = arith.constant 1.06140542 : f32
    %216 = vector.broadcast %cst_57 : f32 to vector<8x32xf32>
    %217 = arith.mulf %216, %215 : vector<8x32xf32>
    %cst_58 = arith.constant -1.45315206 : f32
    %218 = vector.broadcast %cst_58 : f32 to vector<8x32xf32>
    %219 = arith.addf %217, %218 : vector<8x32xf32>
    %220 = arith.mulf %219, %215 : vector<8x32xf32>
    %cst_59 = arith.constant 1.42141378 : f32
    %221 = vector.broadcast %cst_59 : f32 to vector<8x32xf32>
    %222 = arith.addf %220, %221 : vector<8x32xf32>
    %223 = arith.mulf %222, %215 : vector<8x32xf32>
    %cst_60 = arith.constant -0.284496725 : f32
    %224 = vector.broadcast %cst_60 : f32 to vector<8x32xf32>
    %225 = arith.addf %223, %224 : vector<8x32xf32>
    %226 = arith.mulf %225, %215 : vector<8x32xf32>
    %cst_61 = arith.constant 0.254829586 : f32
    %227 = vector.broadcast %cst_61 : f32 to vector<8x32xf32>
    %228 = arith.addf %226, %227 : vector<8x32xf32>
    %229 = arith.mulf %228, %215 : vector<8x32xf32>
    %cst_62 = arith.constant 0.000000e+00 : f32
    %230 = vector.broadcast %cst_62 : f32 to vector<8x32xf32>
    %231 = arith.subf %230, %209 : vector<8x32xf32>
    %232 = arith.mulf %231, %209 : vector<8x32xf32>
    %233 = math.exp %232 : vector<8x32xf32>
    %234 = arith.mulf %229, %233 : vector<8x32xf32>
    %cst_63 = arith.constant 1.000000e+00 : f32
    %235 = vector.broadcast %cst_63 : f32 to vector<8x32xf32>
    %236 = arith.subf %235, %234 : vector<8x32xf32>
    %237 = arith.mulf %208, %236 : vector<8x32xf32>
    %cst_64 = arith.constant 1.000000e+00 : f32
    %238 = vector.broadcast %cst_64 : f32 to vector<8x32xf32>
    %239 = arith.addf %238, %237 : vector<8x32xf32>
    %240 = arith.mulf %201, %239 : vector<8x32xf32>
    %241 = vector.extract_strided_slice %4 {offsets = [5, 0, 0], sizes = [1, 32, 32], strides = [1, 1, 1]} : vector<6x32x32xf32> to vector<1x32x32xf32>
    %242 = vector.shape_cast %241 : vector<1x32x32xf32> to vector<32x32xf32>
    %cst_65 = arith.constant dense<0.000000e+00> : vector<8x32xf32>
    %243 = tpu.matmul %240, %242, %cst_65 {dimension_numbers = #tpu.dot_dimension_numbers<[1], [0], [0], [1], [0, 0, 1, 1], [], []>} : vector<8x32xf32>, vector<32x32xf32>, vector<8x32xf32> -> vector<8x32xf32>
    %244 = vector.extract_strided_slice %5 {offsets = [9, 0], sizes = [1, 32], strides = [1, 1]} : vector<10x32xf32> to vector<1x32xf32>
    %245 = vector.shape_cast %244 : vector<1x32xf32> to vector<32xf32>
    %246 = vector.shape_cast %245 : vector<32xf32> to vector<1x32xf32>
    %247 = vector.broadcast %246 : vector<1x32xf32> to vector<8x32xf32>
    %248 = arith.addf %243, %247 : vector<8x32xf32>
    %249 = arith.addf %248, %163 : vector<8x32xf32>
    %c0_66 = arith.constant 0 : index
    %c0_67 = arith.constant 0 : index
    %c0_68 = arith.constant 0 : index
    %250 = vector.load %arg6[%c0_66, %c0_67, %c0_68] : memref<1x8x32xf32, #tpu.memory_space<vmem>>, vector<1x8x32xf32>
    %251 = vector.shape_cast %250 : vector<1x8x32xf32> to vector<8x32xf32>
    %252 = vector.shape_cast %249 : vector<8x32xf32> to vector<1x8x32xf32>
    tpu.vector_store %arg6[%c0_66, %c0_67, %c0_68], %252 {strides = array<i32>} : memref<1x8x32xf32, #tpu.memory_space<vmem>>, vector<1x8x32xf32>,
    return
  }
  func.func @transform_0(%arg0: i32, %arg1: i32) -> (i32, i32, i32) {
    %c0_i32 = arith.constant 0 : i32
    %c0_i32_0 = arith.constant 0 : i32
    return %arg0, %arg1, %c0_i32 : i32, i32, i32
  }
  func.func @transform_1(%arg0: i32, %arg1: i32) -> (i32, i32, i32) {
    %c0_i32 = arith.constant 0 : i32
    %c0_i32_0 = arith.constant 0 : i32
    %c0_i32_1 = arith.constant 0 : i32
    return %arg0, %c0_i32, %c0_i32_0 : i32, i32, i32
  }
  func.func @transform_2(%arg0: i32, %arg1: i32) -> (i32, i32, i32) {
    %c0_i32 = arith.constant 0 : i32
    %c0_i32_0 = arith.constant 0 : i32
    %c0_i32_1 = arith.constant 0 : i32
    %c0_i32_2 = arith.constant 0 : i32
    return %c0_i32, %c0_i32_0, %c0_i32_1 : i32, i32, i32
  }
  func.func @transform_3(%arg0: i32, %arg1: i32) -> (i32, i32) {
    %c0_i32 = arith.constant 0 : i32
    %c0_i32_0 = arith.constant 0 : i32
    %c0_i32_1 = arith.constant 0 : i32
    return %c0_i32, %c0_i32_0 : i32, i32
  }
  func.func @transform_4(%arg0: i32, %arg1: i32) -> (i32, i32, i32) {
    %c0_i32 = arith.constant 0 : i32
    %c0_i32_0 = arith.constant 0 : i32
    return %arg0, %arg1, %c0_i32 : i32, i32, i32
  }
}

</mosaic_0001>

<bundles_post_ra>
// kernel: tpu_custom_call.1
= control target key start
LH: loop header
LB: loop body
LE: loop exit
PB: predicated region body
PF: predicated region fallthrough
CT: control target
= control target key end

     0   :  { %s2723_s0 = inlined_call_operand.hbm [shape: f32[2,8,32], index: 0, kind: input, shape index: {}]   ;;  %s2724_s1 = inlined_call_operand.hbm [shape: f32[2,8,32], index: 1, kind: input, shape index: {}]   ;;  %s2725_s2 = inlined_call_operand.hbm [shape: f32[6,32,32], index: 2, kind: input, shape index: {}]   ;;  %s2726_s3 = inlined_call_operand.hbm [shape: f32[10,32], index: 3, kind: input, shape index: {}]   ;;  %s2727_s4 = inlined_call_operand.hbm [shape: f32[2,8,32], index: 4, kind: output, shape index: {}]  }
   0x1   :  { %2733 = sst [smem:[#allocation17_spill]] %s2725_s2 }
   0x2   :  { %2734 = sst [smem:[#allocation18_spill]] %s2726_s3 }
   0x3   :  { %9 = vsyncpa [#allocation3], 0 }
   0x4   :  { %11 = vsyncpa [#allocation3 + $0x1], 0 }
   0x5   :  { %12 = vsyncpa [#allocation6], 0 }
   0x6   :  { %14 = vsyncpa [#allocation6 + $0x1], 0 }
   0x7   :  { %15 = vsyncpa [#allocation9], 0 }
   0x8   :  { %16 = vsyncpa [#allocation4], 0 }
   0x9   :  { %18 = vsyncpa [#allocation4 + $0x1], 0  ;;  %s2297_s15 = smov 0   ;;  %s2299_s16 = smov 0  }
   0xa   :  { %s2301_s17 = smov 0   ;;  %s2303_s18 = smov 0  }
   0xb   :  { %s2305_s19 = smov 0   ;;  %s2307_s20 = smov 0  }
   0xc LB: > { %s2328_s21 = sadd.s32 4294967295, %s2253_s20   ;;  %s1692_s22 = sadd.s32 4294967294, %s2253_s20   ;;  %s2253_s20 = sphi %s2307_s20, %s24_s20   ;;  %s2249_s19 = sphi %s2305_s19, %s2759_s19   ;;  %s2245_s18 = sphi %s2303_s18, %s2758_s18   ;;  %s2241_s17 = sphi %s2301_s17, %s2757_s17   ;;  %s2237_s16 = sphi %s2299_s16, %s2756_s16   ;;  %s2233_s15 = sphi %s2297_s15, %s2755_s15  }
   0xd   : > { %p58_p0 = scmp.ne.s32.totalorder %s2237_s16, %s2233_s15  ;;  %p2728_p1 = scmp.eq.s32.totalorder %s2328_s21, 0 }
   0xe   : > { %p158_p3 = scmp.eq.s32.totalorder %s1692_s22, 1  ;;  %p1693_p5 = scmp.ge.s32.totalorder %s2253_s20, 1 }
   0xf   : > { %p2337_p4 = por %p2728_p1, %p58_p0  ;;  %p165_p7 = scmp.lt.s32.totalorder %s2253_s20, 3 }
  0x10   : > { %p2342_p6 = por %p158_p3, %p58_p0  ;;  %s2255_s26 = smov [#allocation7]  }
  0x11   : > { %s2735_s23 = scalar_select %p2337_p4, 1, 0 }
  0x12   : > { %s2736_s24 = scalar_select %p2342_p6, 1, 0 }
  0x13   : > { %p2347_p8 = pnand %p1693_p5, %p165_p7  ;;  %s177_s27 = sshll.u32 %s2255_s26, 4  ;;  %s2351_s27 = int_to_ptr.vmem [resolvable:$true] %s177_s27 }
  0x14   : > { %s2256_s29 = smov [#allocation8]   ;;  %s2739_s2 = sld [smem:[#allocation17_spill]] }
  0x15   : > { %s2737_s25 = scalar_select %p2347_p8, 1, 0 }
  0x16   : > { %p1931_p9 = pneg %p2347_p8  ;;  %s190_s30 = sshll.u32 %s2256_s29, 4  ;;  %s2362_s30 = int_to_ptr.vmem [resolvable:$true] %s190_s30 }
  0x18   : > { %p2358_p11 = pnand %p1931_p9, %p2728_p1 }
  0x1a   : > { %s2043_s7 = scalar_lea.hbm %s2739_s2, 3072  ;;  %p2045_p13 = pneg %p2358_p11 }
  0x1b   : > { %p2044_p12 = scmp.ne.s32.totalorder %s2739_s2, %s2043_s7  ;;  %p2050_p5 = scmp.lt.u32.totalorder %s2043_s7, %s2739_s2 }
  0x1d   : > { %p2046_p0 = pnand %p2045_p13, %p2044_p12 }
  0x1f   : > { %p2047_p3 = pneg %p2046_p0 }
  0x21   : > { %p2052_p7 = pnand %p2050_p5, %p2047_p3 }
  0x23   : > { %2055 = shalt.err (!%p2052_p7)
}
  0x24   : > { %s2056_s12 = scalar_lea.vmem %s2351_s27, 3072  ;;  %p2064_p2 = scmp.lt.s32.totalorder %s2351_s27, %s2351_s27 }
  0x25   : > { %p2057_p9 = scmp.ne.s32.totalorder %s2351_s27, %s2056_s12  ;;  %p2065_p12 = scmp.lt.s32.totalorder %s2056_s12, %s2056_s12 }
  0x27   : > { %p2059_p10 = pnand %p2057_p9, %p2045_p13  ;;  %p2066_p0 = por %p2065_p12, %p2064_p2 }
  0x29   : > { %p2060_p1 = pneg %p2059_p10 }
  0x2b   : > { %p2067_p6 = pnand %p2066_p0, %p2060_p1 }
  0x2d   : > { %2070 = shalt.err (!%p2067_p6)
}
  0x2e   : > { %s2257_s13 = smov 128   ;;  %s2258_s14 = smov 8  }
  0x2f   : > { %1934 = dma.hbm_to_vmem [thread:$0]  (!%p2358_p11), %s2739_s2, 3072, %s2351_s27, [#allocation6], %s2257_s13, %s2257_s13, %s2258_s14  }
  0x30   : > { %s2740_s3 = sld [smem:[#allocation18_spill]] }
  0x36   : > { %s2071_s6 = scalar_lea.hbm %s2740_s3, 256 }
  0x37   : > { %p2072_p2 = scmp.ne.s32.totalorder %s2740_s3, %s2071_s6  ;;  %p2078_p10 = scmp.lt.u32.totalorder %s2071_s6, %s2740_s3 }
  0x39   : > { %p2074_p1 = pnand %p2072_p2, %p2045_p13 }
  0x3b   : > { %p2075_p6 = pneg %p2074_p1 }
  0x3d   : > { %p2080_p3 = pnand %p2078_p10, %p2075_p6 }
  0x3f   : > { %2083 = shalt.err (!%p2080_p3)
}
  0x40   : > { %s2084_s27 = scalar_lea.vmem %s2362_s30, 256  ;;  %p2092_p12 = scmp.lt.s32.totalorder %s2362_s30, %s2362_s30 }
  0x41   : > { %p2085_p5 = scmp.ne.s32.totalorder %s2362_s30, %s2084_s27  ;;  %p2093_p0 = scmp.lt.s32.totalorder %s2084_s27, %s2084_s27 }
  0x43   : > { %p2087_p7 = pnand %p2085_p5, %p2045_p13  ;;  %p2094_p2 = por %p2093_p0, %p2092_p12 }
  0x45   : > { %p2088_p9 = pneg %p2087_p7 }
  0x47   : > { %p2095_p1 = pnand %p2094_p2, %p2088_p9 }
  0x49   : > { %2098 = shalt.err (!%p2095_p1)
}
  0x4a   : > { %1937 = dma.hbm_to_vmem [thread:$0]  (!%p2358_p11), %s2740_s3, 256, %s2362_s30, [#allocation9], %s2257_s13, %s2257_s13, %s2258_s14  }
  0x4b   : > { %s36_s22 = sadd.s32 1, %s2249_s19  ;;  %s45_s26 = sadd.s32 1, %s2241_s17 }
  0x4c   : > { %p38_p13 = scmp.ge.s32.totalorder %s36_s22, 2  ;;  %p52_p6 = scmp.ne.s32.totalorder %s2241_s17, %s2237_s16 }
  0x4d   : > { %p53_p10 = scmp.eq.s32.totalorder %s2253_s20, 0  ;;  %p1951_p3 = scmp.lt.s32.totalorder %s2253_s20, 2 }
  0x4e   : > { %s2761_s22 = smov (%p38_p13, %s36_s22), 0  ;;  %p2742_p7 = scmp.eq.s32.totalorder %s2328_s21, 1 }
  0x4f   : > { %2741 = sst [smem:[#allocation16_spill]] %s2761_s22  ;;  %p54_p5 = por %p53_p10, %p52_p6 }
  0x50   : > { %p2426_p9 = por %p2742_p7, %p52_p6  ;;  %s40_s29 = ssub.s32 %s2249_s19, %s2761_s22 }
  0x51   : > { %s204_s5 = sand.u32 1, %s2241_s17   ;;  %p43_p12 = scmp.eq.s32.totalorder %s40_s29, 0 }
  0x52   : > { %s2743_s28 = scalar_select %p2426_p9, 1, 0 }
  0x53   : > { %s2433_s30 = sshll.u32 %s204_s5, 3  ;;  %s1698_s13 = sshll.u32 %s2249_s19, 7 }
  0x54   : > { %s2437_s14 = scalar_select %p43_p12, %s2241_s17, %s45_s26  }
  0x55   : > { %s2442_s8 = scalar_lea.hbm %s2723_s0, %s1698_s13  ;;  %s208_s9 = scalar_lea.vmem [#allocation2], %s2433_s30 }
  0x56   : > { %s216_s10 = sshll.u32 %s208_s9, 4  ;;  %p2447_p11 = pnand %p1951_p3, %p54_p5  ;;  %s2451_s10 = int_to_ptr.vmem [resolvable:$true] %s216_s10 }
  0x57   : > { %s2456_s26 = scalar_lea.hbm %s2724_s1, %s1698_s13  ;;  %s205_s29 = scalar_lea.sflag [#allocation3], %s204_s5 }
  0x58   : > { %s2099_s6 = scalar_lea.hbm %s2442_s8, 128  ;;  %p2101_p2 = pneg %p2447_p11 }
  0x59   : > { %p2100_p0 = scmp.ne.s32.totalorder %s2442_s8, %s2099_s6  ;;  %s2104_s2 = scalar_lea.hbm %s2723_s0, 256 }
  0x5a   : > { %p2105_p6 = scmp.lt.u32.totalorder %s2442_s8, %s2723_s0  ;;  %p2106_p10 = scmp.lt.u32.totalorder %s2104_s2, %s2099_s6 }
  0x5b   : > { %p2102_p1 = pnand %p2101_p2, %p2100_p0  ;;  %p2108_p5 = scmp.lt.u32.totalorder %s2099_s6, %s2442_s8 }
  0x5c   : > { %p2107_p3 = por %p2106_p10, %p2105_p6 }
  0x5d   : > { %p2103_p13 = pneg %p2102_p1 }
  0x5e   : > { %p2109_p7 = por %p2108_p5, %p2107_p3 }
  0x60   : > { %p2110_p12 = pnand %p2109_p7, %p2103_p13 }
  0x62   : > { %2113 = shalt.err (!%p2110_p12)
}
  0x63   : > { %s2114_s5 = scalar_lea.vmem %s2451_s10, 128  ;;  %s2259_s13 = smov [#allocation2]  }
  0x64   : > { %p2115_p0 = scmp.ne.s32.totalorder %s2451_s10, %s2114_s5  ;;  %s2119_s11 = sshll.u32 %s2259_s13, 4  ;;  %s2120_s11 = int_to_ptr.vmem [resolvable:$false] %s2119_s11 }
  0x65   : > { %s2121_s3 = scalar_lea.vmem %s2120_s11, 256  ;;  %p2122_p4 = scmp.lt.s32.totalorder %s2451_s10, %s2120_s11 }
  0x66   : > { %p2117_p1 = pnand %p2115_p0, %p2101_p2  ;;  %p2123_p6 = scmp.lt.s32.totalorder %s2121_s3, %s2114_s5 }
  0x68   : > { %p2118_p9 = pneg %p2117_p1  ;;  %p2124_p10 = por %p2123_p6, %p2122_p4 }
  0x6a   : > { %p2125_p3 = pnand %p2124_p10, %p2118_p9 }
  0x6c   : > { %2128 = shalt.err (!%p2125_p3)
}
  0x6d   : > { %1941 = dma.hbm_to_vmem [thread:$0]  (!%p2447_p11), %s2442_s8, 128, %s2451_s10, %s205_s29  }
  0x6e   : > { %s223_s2 = sand.u32 1, %s2253_s20   ;;  %s227_s22 = scalar_lea.vmem [#allocation5], %s2433_s30 }
  0x6f   : > { %s234_s12 = sshll.u32 %s227_s22, 4  ;;  %s224_s6 = scalar_lea.sflag [#allocation6], %s223_s2  ;;  %s235_s12 = int_to_ptr.vmem [resolvable:$true] %s234_s12 }
  0x70   : > { %s2129_s7 = scalar_lea.hbm %s2456_s26, 128  ;;  %s2134_s13 = scalar_lea.hbm %s2724_s1, 256 }
  0x71   : > { %p2130_p4 = scmp.ne.s32.totalorder %s2456_s26, %s2129_s7  ;;  %p2135_p5 = scmp.lt.u32.totalorder %s2456_s26, %s2724_s1 }
  0x72   : > { %p2136_p7 = scmp.lt.u32.totalorder %s2134_s13, %s2129_s7  ;;  %p2138_p0 = scmp.lt.u32.totalorder %s2129_s7, %s2456_s26 }
  0x73   : > { %p2132_p9 = pnand %p2130_p4, %p2101_p2 }
  0x74   : > { %p2137_p12 = por %p2136_p7, %p2135_p5 }
  0x75   : > { %p2133_p13 = pneg %p2132_p9 }
  0x76   : > { %p2139_p1 = por %p2138_p0, %p2137_p12 }
  0x78   : > { %p2140_p6 = pnand %p2139_p1, %p2133_p13 }
  0x7a   : > { %2143 = shalt.err (!%p2140_p6)
}
  0x7b   : > { %s2144_s30 = scalar_lea.vmem %s235_s12, 128  ;;  %s2260_s8 = smov [#allocation5]  }
  0x7c   : > { %p2145_p10 = scmp.ne.s32.totalorder %s235_s12, %s2144_s30  ;;  %s2149_s10 = sshll.u32 %s2260_s8, 4  ;;  %s2150_s10 = int_to_ptr.vmem [resolvable:$false] %s2149_s10 }
  0x7d   : > { %s2151_s29 = scalar_lea.vmem %s2150_s10, 256  ;;  %p2152_p9 = scmp.lt.s32.totalorder %s235_s12, %s2150_s10 }
  0x7e   : > { %p2147_p3 = pnand %p2145_p10, %p2101_p2  ;;  %p2153_p8 = scmp.lt.s32.totalorder %s2151_s29, %s2144_s30 }
  0x80   : > { %p2148_p4 = pneg %p2147_p3  ;;  %p2154_p5 = por %p2153_p8, %p2152_p9 }
  0x82   : > { %p2155_p7 = pnand %p2154_p5, %p2148_p4 }
  0x84   : > { %2158 = shalt.err (!%p2155_p7)
}
  0x85   : > { %1944 = dma.hbm_to_vmem [thread:$0]  (!%p2447_p11), %s2456_s26, 128, %s235_s12, %s224_s6  }
  0x86   : > { %p2745_p13 = scmp.ne.s32.totalorder %s2737_s25, 0 }
  0x87   : > { %s2507_s2 = sand.u32 (!%p2745_p13), 1, %s2237_s16   ;;  %p2746_p8 = scmp.ne.s32.totalorder (!%p2745_p13), %s2735_s23, 0 }
  0x88   : > { %243 = sbr.rel (%p2745_p13) target bundleno = 3102 (0xc1e), region = 36  ;;  %s2510_s22 = sshll.u32 (!%p2745_p13), %s2507_s2, 3 }
  0x89   : > { %s246_s7 = scalar_lea.sflag (!%p2745_p13), [#allocation3], %s2507_s2  ;;  %s249_s9 = scalar_lea.vmem (!%p2745_p13), [#allocation2], %s2510_s22 }
  0x8f   : > { %2212 = dma.done.wait (%p2746_p8), %s246_s7, 128  }
  0x90   : > { %2214 = vsyncadd (%p2746_p8), %s246_s7, 4294967168  ;;  %s254_s25 = sand.u32 1, %s2328_s21   ;;  %s258_s26 = scalar_lea.vmem [#allocation5], %s2510_s22 }
  0x91   : > { %s255_s27 = scalar_lea.sflag [#allocation6], %s254_s25 }
  0x92   : > { %2216 = dma.done.wait (%p2746_p8), %s255_s27, 128  }
  0x93   : > { %2218 = vsyncadd (%p2746_p8), %s255_s27, 4294967168  ;;  %p2747_p11 = scmp.eq.s32.totalorder %s2328_s21, 0 }
  0x95   : > { %2220 = dma.done.wait (%p2747_p11), [#allocation6], 3072   ;;  %p2748_p2 = pmov %p2747_p11 }
  0x97   : > { %2222 = vsyncadd (%p2748_p2), [#allocation6], 4294964224  ;;  %p2749_p12 = pmov %p2748_p2 }
  0x98   : > { %p2750_p0 = pmov %p2748_p2 }
  0x99   : > { %2224 = dma.done.wait (%p2749_p12), [#allocation9], 256  }
  0x9a   : > { %2226 = vsyncadd (%p2750_p0), [#allocation9], 4294967040  ;;  %vm324_vm0 = vcmask 261120   ;;  %v297_v0 = vld [vmem:[%s258_s26] sm:$0xff]  ;;  %v296_v1 = vld [vmem:[%s249_s9] sm:$0xff]  ;;  %v2261_v17 = vmov 0.0|0.0   ;;  %v339_v30 = vlaneseq }
  0x9b   : > { %v349_v2 = vsel %vm324_vm0, %v297_v0, 0.0  ;;  %v325_v3 = vsel %vm324_vm0, %v296_v1, 0.0  ;;  %v302_v14 = vld [vmem:[#allocation7 + $0x20] sm:$0xff]  ;;  %v303_v15 = vld [vmem:[#allocation7 + $0x28] sm:$0xff]  ;;  %1887 = vmatprep.subr.bf16.mxu1 %v2261_v17  ;;  %1881 = vmatprep.subr.bf16.mxu0 %v2261_v17  ;;  %v304_v20 = vld [vmem:[#allocation7 + $0x30] sm:$0xff]  ;;  %vm2262_vm1 = vmmov 0  }
  0x9c   : > { %350 = vadd.xlane.f32.xlu0 %v349_v2  ;;  %v298_v16 = vld [vmem:[#allocation7] sm:$0xff]  ;;  %v1888_v18 = vpack.c.bf16 %v303_v15, %v302_v14  ;;  %v299_v19 = vld [vmem:[#allocation7 + $0x8] sm:$0xff]  ;;  %v305_v21 = vld [vmem:[#allocation7 + $0x38] sm:$0xff]  ;;  %v2263_v23 = vmov 0.0   ;;  %v2546_v34 = vshrl.u32 %v339_v30, 7  ;;  %vm592_vm2 = vcmask 64512  }
  0x9d   : > { %v1882_v22 = vpack.c.bf16 %v299_v19, %v298_v16  ;;  %1794 = vmatprep.mubr.msk.f32.mxu1 %vm2262_vm1, %v2263_v23  ;;  %v300_v24 = vld [vmem:[#allocation7 + $0x10] sm:$0xff]  ;;  %v301_v25 = vld [vmem:[#allocation7 + $0x18] sm:$0xff]  ;;  %1783 = vmatprep.mubr.msk.f32.mxu0 %vm2262_vm1, %v2263_v23  ;;  %v1891_v26 = vpack.c.bf16 %v305_v21, %v304_v20  ;;  %v2549_v37 = vld [vmem:[#allocation8] sm:$0xff]  ;;  %s2264_s21 = smov 120   ;;  %s2265_s23 = smov 112   ;;  %vm1266_vm3 = vcmask 130048  }
  0x9e   : > { %1889 = vmatpush3.bf16.msra.mxu1 %v1888_v18  ;;  %v1885_v27 = vpack.c.bf16 %v301_v25, %v300_v24  ;;  %v341_v36 = vsub.s32 0, %v2546_v34  ;;  %v346_v38 = vsub.s32 1, %v2546_v34  ;;  %v306_v47 = vld [vmem:[#allocation7 + $0x40] sm:$0xff]  ;;  %v307_v48 = vld [vmem:[#allocation7 + $0x48] sm:$0xff]  ;;  %v308_v52 = vld [vmem:[#allocation7 + $0x50] sm:$0xff]  ;;  %v443_v55 = vsub.s32 3, %v2546_v34 }
  0x9f   : > { %1883 = vmatpush3.bf16.msra.mxu0 %v1882_v22  ;;  %1890 = vmatprep.subr.bf16.mxu1 %v2261_v17  ;;  %v1894_v50 = vpack.c.bf16 %v307_v48, %v306_v47  ;;  %v309_v53 = vld [vmem:[#allocation7 + $0x58] sm:$0xff]  ;;  %v366_v57 = vsub.s32 2, %v2546_v34  ;;  %s2266_s12 = smov 104   ;;  %s2267_s6 = smov 8   ;;  %vm1268_vm4 = vcmask 195584  }
  0xa0   : > { %326 = vadd.xlane.f32.xlu0 %v325_v3  ;;  %1884 = vmatprep.subr.bf16.mxu0 %v2261_v17  ;;  %v342_v39 = vrot.slane %v2549_v37, %v341_v36  ;;  %v347_v41 = vrot.slane %v2549_v37, %v346_v38  ;;  %v1897_v54 = vpack.c.bf16 %v309_v53, %v308_v52  ;;  %s2268_s5 = smov 16   ;;  %s2269_s13 = smov 24  }
  0xa1   : > { %v444_v56 = vrot.slane %v2549_v37, %v443_v55  ;;  %v367_v61 = vrot.slane %v2549_v37, %v366_v57  ;;  %s1726_s11 = sshll.u32 %s2245_s18, 7  ;;  %s295_s3 = scalar_lea.vmem [#allocation10], %s2510_s22 }
  0xa2   : > { %1892 = vmatpush3.bf16.msra.mxu1 %v1891_v26  ;;  %s1569_s30 = sshll.u32 %s295_s3, 4  ;;  %s2673_s29 = scalar_lea.hbm %s2727_s4, %s1726_s11  ;;  %s2675_s30 = int_to_ptr.vmem [resolvable:$true] %s1569_s30 }
  0xa3   : > { %1886 = vmatpush3.bf16.msra.mxu0 %v1885_v27  ;;  %1808 = vmatprep.subr.mxu1 %v2263_v23  ;;  %s1555_s7 = scalar_lea.sflag [#allocation4], %s2507_s2  ;;  %s2159_s18 = scalar_lea.vmem %s2675_s30, 128 }
  0xa4   : > { %1893 = vmatprep.subr.bf16.mxu0 %v2261_v17  ;;  %p2160_p1 = scmp.ne.s32.totalorder %s2675_s30, %s2159_s18  ;;  %p2751_p6 = scmp.ne.s32.totalorder %s2743_s28, 0 }
  0xa5   : > { %s2271_s22 = smov [#allocation10]  }
  0xa6   : > { %p2161_p10 = pnand %p2160_p1, %p2751_p6  ;;  %s2163_s9 = sshll.u32 %s2271_s22, 4  ;;  %s2164_s9 = int_to_ptr.vmem [resolvable:$false] %s2163_s9 }
  0xa7   : > { %s2165_s25 = scalar_lea.vmem %s2164_s9, 256  ;;  %p2166_p4 = scmp.lt.s32.totalorder %s2675_s30, %s2164_s9 }
  0xa8   : > { %p2162_p3 = pneg %p2161_p10  ;;  %p2167_p9 = scmp.lt.s32.totalorder %s2165_s25, %s2159_s18 }
  0xaa   : > { %p2168_p5 = por %p2167_p9, %p2166_p4 }
  0xac   : > { %p2169_p7 = pnand %p2168_p5, %p2162_p3 }
 0x129   : > { %v351_v4 = vpop.xlane.xlu0 %350 }
 0x12a   : > { %v352_v5 = vmul.f32 0.03125, %v351_v4 }
 0x12c   : > { %v353_v6 = vsub.f32 %v297_v0, %v352_v5 }
 0x12d   : > { %v327_v7 = vpop.xlane.xlu0 %326 }
 0x12e   : > { %v329_v8 = vmul.f32 0.03125, %v327_v7  ;;  %v354_v9 = vmul.f32 %v353_v6, %v353_v6 }
 0x130   : > { %v330_v10 = vsub.f32 %v296_v1, %v329_v8  ;;  %v355_v11 = vsel %vm324_vm0, %v354_v9, 0.0  ;;  %v520_v1 = vsub.s32 4, %v2546_v34 }
 0x131   : > { %356 = vadd.xlane.f32.xlu1 %v355_v11 }
 0x132   : > { %v331_v12 = vmul.f32 %v330_v10, %v330_v10  ;;  %v521_v2 = vrot.slane %v2549_v37, %v520_v1 }
 0x134   : > { %v332_v13 = vsel %vm324_vm0, %v331_v12, 0.0 }
 0x135   : > { %333 = vadd.xlane.f32.xlu1 %v332_v13 }
 0x1be   : > { %v357_v28 = vpop.xlane.xlu1 %356 }
 0x1bf   : > { %v358_v29 = vmul.f32 0.03125, %v357_v28 }
 0x1c1   : > { %v359_v31 = vadd.f32 1e-05, %v358_v29 }
 0x1c2   : > { %v334_v32 = vpop.xlane.xlu1 %333 }
 0x1c3   : > { %2017 = vrsqrt.f32 %v359_v31  ;;  %v335_v33 = vmul.f32 0.03125, %v334_v32 }
 0x1c5   : > { %v336_v35 = vadd.f32 1e-05, %v335_v33 }
 0x1c7   : > { %2019 = vrsqrt.f32 %v336_v35 }
 0x1cd   : > { %v2018_v40 = vpop.eup %2017 }
 0x1ce   : > { %v361_v42 = vmul.f32 %v2018_v40, %v353_v6 }
 0x1d0   : > { %v362_v43 = vmul.f32 %v361_v42, %v342_v39 }
 0x1d1   : > { %v2020_v44 = vpop.eup %2019 }
 0x1d2   : > { %v363_v45 = vadd.f32 %v362_v43, %v347_v41  ;;  %v338_v46 = vmul.f32 %v2020_v44, %v330_v10 }
 0x1d4   : > { %1795 = vmatmul.mubr.msk.f32.vlgmr.msra.gmra.mrb[0].mxu1 %vm324_vm0, %v363_v45  ;;  %v343_v49 = vmul.f32 %v342_v39, %v338_v46 }
 0x1d5   : > { %1810 = vmatprep.mubr.msk.f32.mxu1 %vm2262_vm1, %v2263_v23 }
 0x1d6   : > { %v2561_v51 = vadd.f32 %v347_v41, %v343_v49 }
 0x1d8   : > { %1784 = vmatmul.mubr.msk.f32.vlgmr.msra.gmra.mrb[0].mxu0 %vm324_vm0, %v2561_v51 }
 0x1d9   : > { %1895 = vmatpush3.bf16.msra.mxu0 %v1894_v50  ;;  %1805 = vmatprep.mubr.msk.f32.mxu0 %vm2262_vm1, %v2263_v23 }
 0x1da   : > { %1896 = vmatprep.subr.bf16.mxu0 %v2261_v17 }
 0x1dd   : > { %1898 = vmatpush3.bf16.msra.mxu0 %v1897_v54 }
 0x1de   : > { %1828 = vmatprep.subr.mxu0 %v2263_v23 }
 0x1e0   : > { %1806 = vmatmul.mubr.msk.f32.vlgmr.msra.gmra.mrb[2].mxu0 %vm324_vm0, %v363_v45 }
 0x1e1   : > { %1830 = vmatprep.mubr.msk.f32.mxu0 %vm2262_vm1, %v2263_v23 }
 0x2a7   : > { %v514_v58 = vpop.f32.mrb[0].mxu1 }
 0x2a8   : > { %v515_v59 = vadd.f32 %v514_v58, %v444_v56  ;;  %v1796_v60 = vpop.f32.mrb[1].mxu1 }
 0x2aa   : > { %1809 = vmatpush3.xpose.msk.msra.mxu1 %vm592_vm2, %v515_v59 }
 0x2ab   : > { %v437_v62 = vpop.f32.mrb[0].mxu0  ;;  %1813 = vmatprep.subr.mxu1 %v2263_v23 }
 0x2ac   : > { %v438_v63 = vadd.f32 %v437_v62, %v367_v61  ;;  %v1785_v0 = vpop.f32.mrb[1].mxu0 }
 0x2ae   : > { %754 = vrot.lane.b32.xlu1 %v438_v63, %s2264_s21  ;;  %1811 = vmatmul.mubr.msk.f32.vlgmr.msra.gmra.mrb[2].mxu1 %vm592_vm2, %v438_v63 }
 0x2af   : > { %1815 = vmatprep.mubr.msk.f32.mxu1 %vm2262_vm1, %v2263_v23 }
 0x2b2   : > { %923 = vrot.lane.b32.xlu1 %v515_v59, %s2265_s23 }
 0x2b3   : > { %v588_v3 = vpop.f32.mrb[2].mxu0 }
 0x2b4   : > { %v2585_v4 = vadd.f32 %v588_v3, %v521_v2  ;;  %v1807_v5 = vpop.f32.mrb[3].mxu0 }
 0x2b6   : > { %1814 = vmatpush3.msra.mxu1 %v2585_v4 }
 0x2b7   : > { %1818 = vmatprep.subr.mxu1 %v2263_v23 }
 0x320   : > { %v755_v6 = vpop.permute.xlu1 %754 }
 0x324   : > { %v924_v7 = vpop.permute.xlu1 %923 }
 0x325   : > { %1829 = vmatpush3.xpose.msk.msra.mxu0 %vm592_vm2, %v924_v7 }
 0x326   : > { %1838 = vmatprep.subr.mxu0 %v2263_v23 }
 0x381   : > { %v665_v8 = vpop.f32.mrb[2].mxu1 }
 0x382   : > { %v669_v9 = vmul.f32 0.35355338, %v665_v8  ;;  %v1812_v10 = vpop.f32.mrb[3].mxu1  ;;  %v310_v8 = vld [vmem:[#allocation7 + $0x60] sm:$0xff] }
 0x384   : > { %v670_v11 = vsel %vm592_vm2, %v669_v9, -inf }
 0x385   : > { %671 = vmax.xlane.f32.xlu0 %v670_v11  ;;  %v312_v11 = vld [vmem:[#allocation7 + $0x70] sm:$0xff] }
 0x39b   : > { %756 = vrot.lane.b32.xlu0 %v515_v59, %s2264_s21 }
 0x39f   : > { %1089 = vrot.lane.b32.xlu0 %v515_v59, %s2266_s12 }
 0x412   : > { %v672_v12 = vpop.xlane.xlu0 %671 }
 0x413   : > { %v673_v13 = vsub.f32 %v669_v9, %v672_v12  ;;  %v311_v9 = vld [vmem:[#allocation7 + $0x68] sm:$0xff]  ;;  %v313_v12 = vld [vmem:[#allocation7 + $0x78] sm:$0xff] }
 0x414   : > { %v1900_v10 = vpack.c.bf16 %v311_v9, %v310_v8 }
 0x415   : > { %v674_v14 = vmul.f32 1.442695, %v673_v13  ;;  %v1903_v13 = vpack.c.bf16 %v313_v12, %v312_v11 }
 0x416   : > { %v757_v18 = vpop.permute.xlu0 %756 }
 0x417   : > { %2021 = vpow2.f32 %v674_v14 }
 0x41a   : > { %v1090_v21 = vpop.permute.xlu0 %1089 }
 0x421   : > { %v2022_v15 = vpop.eup %2021 }
 0x422   : > { %v676_v16 = vsel %vm592_vm2, %v2022_v15, 0.0 }
 0x423   : > { %677 = vadd.xlane.f32.xlu1 %v676_v16 }
 0x434   : > { %921 = vrot.lane.b32.xlu1 %v438_v63, %s2265_s23 }
 0x438   : > { %1087 = vrot.lane.b32.xlu1 %v438_v63, %s2266_s12 }
 0x4b0   : > { %v678_v19 = vpop.xlane.xlu1 %677 }
 0x4b1   : > { %2023 = vrcp.f32 %v678_v19 }
 0x4b4   : > { %v922_v20 = vpop.permute.xlu1 %921 }
 0x4b5   : > { %1831 = vmatmul.mubr.msk.f32.vlgmr.msra.gmra.mrb[4].mxu0 %vm592_vm2, %v922_v20 }
 0x4b6   : > { %1839 = vmatpush3.xpose.msk.msra.mxu0 %vm592_vm2, %v1090_v21  ;;  %1840 = vmatprep.mubr.msk.f32.mxu0 %vm2262_vm1, %v2263_v23 }
 0x4b7   : > { %1899 = vmatprep.subr.bf16.mxu0 %v2261_v17 }
 0x4b8   : > { %v1088_v22 = vpop.permute.xlu1 %1087 }
 0x4b9   : > { %1841 = vmatmul.mubr.msk.f32.vlgmr.msra.gmra.mrb[6].mxu0 %vm592_vm2, %v1088_v22 }
 0x4ba   : > { %1856 = vmatprep.mubr.msk.f32.mxu0 %vm2262_vm1, %v2263_v23  ;;  %1901 = vmatpush3.bf16.msra.mxu0 %v1900_v10 }
 0x4bb   : > { %v2024_v24 = vpop.eup %2023  ;;  %1902 = vmatprep.subr.bf16.mxu0 %v2261_v17 }
 0x4bc   : > { %v680_v25 = vmul.f32 %v2024_v24, %v2022_v15 }
 0x4be   : > { %1816 = vmatmul.mubr.msk.f32.vlgmr.msra.gmra.mrb[4].mxu1 %vm592_vm2, %v680_v25  ;;  %1904 = vmatpush3.bf16.msra.mxu0 %v1903_v13 }
 0x4bf   : > { %1819 = vmatpush3.xpose.msk.msra.mxu1 %vm592_vm2, %v757_v18  ;;  %1820 = vmatprep.mubr.msk.f32.mxu1 %vm2262_vm1, %v2263_v23 }
 0x4c0   : > { %1823 = vmatprep.subr.mxu1 %v2263_v23  ;;  %1911 = vmatprep.subr.bf16.mxu0 %v2261_v17 }
 0x4c2   : > { %1821 = vmatmul.mubr.msk.f32.vlgmr.msra.gmra.mrb[6].mxu1 %vm592_vm2, %v755_v6 }
 0x4c3   : > { %1825 = vmatprep.mubr.msk.f32.mxu1 %vm2262_vm1, %v2263_v23 }
 0x588   : > { %v995_v26 = vpop.f32.mrb[4].mxu0 }
 0x589   : > { %v999_v27 = vmul.f32 0.35355338, %v995_v26  ;;  %v1832_v28 = vpop.f32.mrb[5].mxu0 }
 0x58a   : > { %v1272_v28 = vsub.s32 5, %v2546_v34 }
 0x58b   : > { %v1000_v29 = vsel %vm592_vm2, %v999_v27, -inf }
 0x58c   : > { %1001 = vmax.xlane.f32.xlu1 %v1000_v29  ;;  %v1161_v30 = vpop.f32.mrb[6].mxu0  ;;  %v1273_v29 = vrot.slane %v2549_v37, %v1272_v28 }
 0x58d   : > { %v1842_v31 = vpop.f32.mrb[7].mxu0  ;;  %v1165_v41 = vmul.f32 0.35355338, %v1161_v30 }
 0x58f   : > { %v1166_v43 = vsel %vm592_vm2, %v1165_v41, -inf }
 0x591   : > { %v2614_v32 = vpop.f32.mrb[4].mxu1 }
 0x592   : > { %v1817_v33 = vpop.f32.mrb[5].mxu1 }
 0x595   : > { %v828_v35 = vpop.f32.mrb[6].mxu1 }
 0x596   : > { %v832_v39 = vmul.f32 0.35355338, %v828_v35  ;;  %v1822_v40 = vpop.f32.mrb[7].mxu1 }
 0x598   : > { %v833_v42 = vsel %vm592_vm2, %v832_v39, -inf }
 0x599   : > { %834 = vmax.xlane.f32.xlu0 %v833_v42 }
 0x59d   : > { %1167 = vmax.xlane.f32.xlu0 %v1166_v43  ;;  %v314_v43 = vld [vmem:[#allocation7 + $0x80] sm:$0xff] }
 0x619   : > { %v1002_v44 = vpop.xlane.xlu1 %1001 }
 0x61a   : > { %v1003_v45 = vsub.f32 %v999_v27, %v1002_v44  ;;  %v315_v44 = vld [vmem:[#allocation7 + $0x88] sm:$0xff] }
 0x61c   : > { %v1004_v46 = vmul.f32 1.442695, %v1003_v45  ;;  %v1906_v45 = vpack.c.bf16 %v315_v44, %v314_v43 }
 0x61e   : > { %2025 = vpow2.f32 %v1004_v46  ;;  %v317_v46 = vld [vmem:[#allocation7 + $0x98] sm:$0xff] }
 0x626   : > { %v835_v47 = vpop.xlane.xlu0 %834 }
 0x627   : > { %v836_v48 = vsub.f32 %v832_v39, %v835_v47 }
 0x628   : > { %v2026_v49 = vpop.eup %2025 }
 0x629   : > { %v837_v50 = vmul.f32 1.442695, %v836_v48  ;;  %v1006_v52 = vsel %vm592_vm2, %v2026_v49, 0.0 }
 0x62a   : > { %1007 = vadd.xlane.f32.xlu0 %v1006_v52  ;;  %v1168_v53 = vpop.xlane.xlu0 %1167  ;;  %v1363_v52 = vsub.s32 6, %v2546_v34 }
 0x62b   : > { %2027 = vpow2.f32 %v837_v50  ;;  %v1169_v54 = vsub.f32 %v1165_v41, %v1168_v53  ;;  %v1368_v53 = vsub.s32 7, %v2546_v34 }
 0x62d   : > { %v1170_v55 = vmul.f32 1.442695, %v1169_v54  ;;  %v1364_v54 = vrot.slane %v2549_v37, %v1363_v52 }
 0x62f   : > { %2029 = vpow2.f32 %v1170_v55 }
 0x635   : > { %v2028_v56 = vpop.eup %2027 }
 0x636   : > { %v839_v57 = vsel %vm592_vm2, %v2028_v56, 0.0 }
 0x637   : > { %840 = vadd.xlane.f32.xlu0 %v839_v57  ;;  %v1369_v57 = vrot.slane %v2549_v37, %v1368_v53 }
 0x639   : > { %v2030_v58 = vpop.eup %2029 }
 0x63a   : > { %v1172_v59 = vsel %vm592_vm2, %v2030_v58, 0.0 }
 0x63b   : > { %1173 = vadd.xlane.f32.xlu1 %v1172_v59 }
 0x64c   : > { %1011 = vrot.lane.b32.xlu1 %v2585_v4, %s2265_s23 }
 0x64d   : > { %845 = vrot.lane.b32.xlu0 %v2585_v4, %s2264_s21 }
 0x650   : > { %1177 = vrot.lane.b32.xlu1 %v2585_v4, %s2266_s12 }
 0x6b7   : > { %v1008_v60 = vpop.xlane.xlu0 %1007 }
 0x6c4   : > { %v841_v61 = vpop.xlane.xlu0 %840 }
 0x6c5   : > { %2031 = vrcp.f32 %v841_v61  ;;  %v319_v61 = vld [vmem:[#allocation7 + $0xa8] sm:$0xff] }
 0x6c6   : > { %2033 = vrcp.f32 %v1008_v60  ;;  %v318_v60 = vld [vmem:[#allocation7 + $0xa0] sm:$0xff] }
 0x6c8   : > { %v1174_v62 = vpop.xlane.xlu1 %1173  ;;  %v846_v63 = vpop.permute.xlu0 %845 }
 0x6c9   : > { %1824 = vmatpush3.msra.mxu1 %v846_v63  ;;  %2035 = vrcp.f32 %v1174_v62  ;;  %v1912_v62 = vpack.c.bf16 %v319_v61, %v318_v60  ;;  %v320_v63 = vld [vmem:[#allocation7 + $0xb0] sm:$0xff] }
 0x6ca   : > { %1833 = vmatprep.subr.mxu1 %v2263_v23 }
 0x6cc   : > { %v1012_v2 = vpop.permute.xlu1 %1011 }
 0x6cf   : > { %v2032_v0 = vpop.eup %2031 }
 0x6d0   : > { %v843_v1 = vmul.f32 %v2032_v0, %v2028_v56  ;;  %v2034_v3 = vpop.eup %2033  ;;  %v1178_v6 = vpop.permute.xlu1 %1177  ;;  %v321_v0 = vld [vmem:[#allocation7 + $0xb8] sm:$0xff] }
 0x6d1   : > { %v1010_v4 = vmul.f32 %v2034_v3, %v2026_v49 }
 0x6d2   : > { %1826 = vmatmul.mubr.msk.f32.vlgmr.msra.gmra.mrb[8].mxu1 %vm592_vm2, %v843_v1  ;;  %v1915_v1 = vpack.c.bf16 %v321_v0, %v320_v63 }
 0x6d3   : > { %1834 = vmatpush3.msra.mxu1 %v1012_v2  ;;  %1835 = vmatprep.mubr.msk.f32.mxu1 %vm2262_vm1, %v2263_v23  ;;  %v2036_v5 = vpop.eup %2035  ;;  %v323_v2 = vld [vmem:[#allocation8 + $0x8] sm:$0x3] }
 0x6d4   : > { %1843 = vmatprep.subr.mxu1 %v2263_v23  ;;  %v1176_v7 = vmul.f32 %v2036_v5, %v2030_v58  ;;  %v1374_v3 = vrot.slane %v323_v2, %v341_v36 }
 0x6d6   : > { %1836 = vmatmul.mubr.msk.f32.vlgmr.msra.gmra.mrb[10].mxu1 %vm592_vm2, %v1010_v4 }
 0x6d7   : > { %1844 = vmatpush3.msra.mxu1 %v1178_v6  ;;  %1845 = vmatprep.mubr.msk.f32.mxu1 %vm2262_vm1, %v2263_v23 }
 0x6d8   : > { %1905 = vmatprep.subr.bf16.mxu1 %v2261_v17 }
 0x6da   : > { %1846 = vmatmul.mubr.msk.f32.vlgmr.msra.gmra.mrb[12].mxu1 %vm592_vm2, %v1176_v7 }
 0x6db   : > { %1867 = vmatprep.mubr.msk.f32.mxu1 %vm2262_vm1, %v2263_v23  ;;  %1907 = vmatpush3.bf16.msra.mxu1 %v1906_v45 }
 0x6dc   : > { %1908 = vmatprep.subr.bf16.mxu1 %v2261_v17 }
 0x7a5   : > { %v917_v14 = vpop.f32.mrb[8].mxu1 }
 0x7a6   : > { %1254 = vrot.lane.b32.xlu1 %v917_v14, %s2267_s6  ;;  %v1827_v15 = vpop.f32.mrb[9].mxu1 }
 0x7a9   : > { %v1083_v16 = vpop.f32.mrb[10].mxu1 }
 0x7aa   : > { %1258 = vrot.lane.b32.xlu0 %v1083_v16, %s2268_s5  ;;  %v1837_v18 = vpop.f32.mrb[11].mxu1 }
 0x7ad   : > { %v1249_v19 = vpop.f32.mrb[12].mxu1 }
 0x7ae   : > { %1262 = vrot.lane.b32.xlu1 %v1249_v19, %s2269_s13  ;;  %v1847_v20 = vpop.f32.mrb[13].mxu1 }
 0x818   : > { %v1255_v21 = vpop.permute.xlu1 %1254 }
 0x819   : > { %v1265_v24 = vsel %vm592_vm2, %v2614_v32, %v1255_v21 }
 0x81c   : > { %v1259_v22 = vpop.permute.xlu0 %1258 }
 0x81d   : > { %v1267_v25 = vsel %vm1266_vm3, %v1265_v24, %v1259_v22 }
 0x820   : > { %v1263_v26 = vpop.permute.xlu1 %1262 }
 0x821   : > { %v1269_v27 = vsel %vm1268_vm4, %v1267_v25, %v1263_v26  ;;  %v2270_v26 = vmov -1.0  }
 0x822   : > { %1857 = vmatmul.mubr.msk.f32.vlgmr.msra.gmra.mrb[8].mxu0 %vm324_vm0, %v1269_v27 }
 0x823   : > { %1878 = vmatprep.mubr.msk.f32.mxu0 %vm2262_vm1, %v2263_v23  ;;  %1913 = vmatpush3.bf16.msra.mxu0 %v1912_v62 }
 0x824   : > { %1914 = vmatprep.subr.bf16.mxu0 %v2261_v17 }
 0x827   : > { %1916 = vmatpush3.bf16.msra.mxu0 %v1915_v1 }
 0x8f5   : > { %v1343_v30 = vpop.f32.mrb[8].mxu0 }
 0x8f6   : > { %v1344_v31 = vadd.f32 %v1343_v30, %v1273_v29  ;;  %v1858_v33 = vpop.f32.mrb[9].mxu0 }
 0x8f7   : > { %v1478_v33 = vrot.slane %v323_v2, %v346_v38 }
 0x8f8   : > { %v2649_v35 = vadd.f32 %v1344_v31, %v2561_v51  ;;  %v316_v51 = vld [vmem:[#allocation7 + $0x90] sm:$0xff] }
 0x8f9   : > { %v1909_v47 = vpack.c.bf16 %v317_v46, %v316_v51 }
 0x8fa   : > { %v1348_v32 = vsel %vm324_vm0, %v2649_v35, 0.0 }
 0x8fb   : > { %1349 = vadd.xlane.f32.xlu0 %v1348_v32  ;;  %1910 = vmatpush3.bf16.msra.mxu1 %v1909_v47 }
 0x988   : > { %v1350_v39 = vpop.xlane.xlu0 %1349 }
 0x989   : > { %v1351_v40 = vmul.f32 0.03125, %v1350_v39 }
 0x98b   : > { %v1352_v41 = vsub.f32 %v2649_v35, %v1351_v40 }
 0x98d   : > { %v1353_v42 = vmul.f32 %v1352_v41, %v1352_v41 }
 0x98f   : > { %v1354_v23 = vsel %vm324_vm0, %v1353_v42, 0.0 }
 0x990   : > { %1355 = vadd.xlane.f32.xlu1 %v1354_v23 }
 0xa1d   : > { %v1356_v48 = vpop.xlane.xlu1 %1355 }
 0xa1e   : > { %v1357_v49 = vmul.f32 0.03125, %v1356_v48 }
 0xa20   : > { %v1358_v50 = vadd.f32 1e-05, %v1357_v49 }
 0xa22   : > { %2037 = vrsqrt.f32 %v1358_v50 }
 0xa2c   : > { %v2038_v55 = vpop.eup %2037 }
 0xa2d   : > { %v1360_v56 = vmul.f32 %v2038_v55, %v1352_v41 }
 0xa2f   : > { %v1365_v58 = vmul.f32 %v1364_v54, %v1360_v56 }
 0xa31   : > { %v1370_v59 = vadd.f32 %v1369_v57, %v1365_v58 }
 0xa33   : > { %1868 = vmatmul.mubr.msk.f32.vlgmr.msra.gmra.mrb[14].mxu1 %vm324_vm0, %v1370_v59 }
 0xb06   : > { %v1444_v4 = vpop.f32.mrb[14].mxu1 }
 0xb07   : > { %v1445_v37 = vadd.f32 %v1444_v4, %v1374_v3  ;;  %v1869_v5 = vpop.f32.mrb[15].mxu1 }
 0xb09   : > { %v1449_v6 = vmul.f32 0.70710677, %v1445_v37  ;;  %v1448_v29 = vmul.f32 0.5, %v1445_v37 }
 0xb0b   : > { %v1452_v7 = vand.u32 2147483647, %v1449_v6  ;;  %vm1450_vm5 = vcmp.ge.f32.partialorder %v1449_v6, 0.0 }
 0xb0c   : > { %v1451_v27 = vsel %vm1450_vm5, 1.0, %v2270_v26 }
 0xb0d   : > { %v1453_v8 = vmul.f32 0.3275911, %v1452_v7  ;;  %v1466_v10 = vsub.f32 0.0, %v1452_v7 }
 0xb0f   : > { %v1454_v9 = vadd.f32 1.0, %v1453_v8  ;;  %v1467_v12 = vmul.f32 %v1466_v10, %v1452_v7 }
 0xb11   : > { %2039 = vrcp.f32 %v1454_v9  ;;  %v1468_v14 = vmul.f32 1.442695, %v1467_v12 }
 0xb13   : > { %2041 = vpow2.f32 %v1468_v14 }
 0xb1b   : > { %v2040_v11 = vpop.eup %2039 }
 0xb1c   : > { %v1457_v17 = vmul.f32 1.0614054, %v2040_v11 }
 0xb1d   : > { %v2042_v22 = vpop.eup %2041 }
 0xb1e   : > { %v1458_v13 = vadd.f32 -1.4531521, %v1457_v17 }
 0xb20   : > { %v1459_v15 = vmul.f32 %v2040_v11, %v1458_v13 }
 0xb22   : > { %v1460_v16 = vadd.f32 1.4214138, %v1459_v15 }
 0xb24   : > { %v1461_v18 = vmul.f32 %v2040_v11, %v1460_v16 }
 0xb26   : > { %v1462_v19 = vadd.f32 -0.28449672, %v1461_v18 }
 0xb28   : > { %v1463_v36 = vmul.f32 %v2040_v11, %v1462_v19 }
 0xb2a   : > { %v1464_v20 = vadd.f32 0.2548296, %v1463_v36 }
 0xb2c   : > { %v1465_v21 = vmul.f32 %v2040_v11, %v1464_v20 }
 0xb2e   : > { %v1470_v24 = vmul.f32 %v2042_v22, %v1465_v21 }
 0xb30   : > { %v1471_v25 = vsub.f32 1.0, %v1470_v24 }
 0xb32   : > { %v1472_v28 = vmul.f32 %v1471_v25, %v1451_v27 }
 0xb34   : > { %v1473_v30 = vadd.f32 1.0, %v1472_v28 }
 0xb36   : > { %v1474_v31 = vmul.f32 %v1473_v30, %v1448_v29 }
 0xb38   : > { %1879 = vmatmul.mubr.msk.f32.vlgmr.msra.gmra.mrb[10].mxu0 %vm324_vm0, %v1474_v31 }
 0xc0b   : > { %v1548_v32 = vpop.f32.mrb[10].mxu0 }
 0xc0c   : > { %v1549_v39 = vadd.f32 %v1548_v32, %v1478_v33  ;;  %v1880_v40 = vpop.f32.mrb[11].mxu0 }
 0xc0e   : > { %v1552_v41 = vadd.f32 %v1549_v39, %v2649_v35 }
 0xc10   : > { %1553 = vst.msk [vmem:[%s295_s3] sm:$0xff] %vm324_vm0, %v1552_v41 }
 0xc11   : > { %2172 = shalt.err (!%p2169_p7)
}
 0xc12   : > { %s2173_s2 = scalar_lea.hbm %s2673_s29, 128  ;;  %s2177_s21 = scalar_lea.hbm %s2727_s4, 256 }
 0xc13   : > { %p2174_p13 = scmp.ne.s32.totalorder %s2673_s29, %s2173_s2  ;;  %p2178_p2 = scmp.lt.u32.totalorder %s2673_s29, %s2727_s4 }
 0xc14   : > { %p2179_p12 = scmp.lt.u32.totalorder %s2177_s21, %s2173_s2  ;;  %p2181_p1 = scmp.lt.u32.totalorder %s2173_s2, %s2673_s29 }
 0xc15   : > { %p2175_p8 = pnand %p2174_p13, %p2751_p6 }
 0xc16   : > { %p2180_p0 = por %p2179_p12, %p2178_p2 }
 0xc17   : > { %p2176_p11 = pneg %p2175_p8 }
 0xc18   : > { %p2182_p10 = por %p2181_p1, %p2180_p0 }
 0xc1a   : > { %p2183_p3 = pnand %p2182_p10, %p2176_p11 }
 0xc1c   : > { %2186 = shalt.err (!%p2183_p3)
}
 0xc1d   : > { %1929 = dma.vmem_to_hbm [thread:$0]  (%p2751_p6), %s2675_s30, 128, %s2673_s29, %s1555_s7  }
 0xc1e PF: > { %s1581_s6 = sand.u32 1, %s2233_s15   ;;  %p2752_p4 = scmp.ne.s32.totalorder %s2736_s24, 0 }
 0xc1f   : > { %p2753_p9 = scmp.ge.s32.totalorder %s2253_s20, 2  ;;  %s1582_s5 = scalar_lea.sflag [#allocation4], %s1581_s6 }
 0xc21   : > { %p1946_p5 = pnand %p2753_p9, %p2752_p4 }
 0xc23   : > { %2228 = dma.done.wait (!%p1946_p5), %s1582_s5, 128  }
 0xc24   : > { %2230 = vsyncadd (!%p1946_p5), %s1582_s5, 4294967168  ;;  %s24_s20 = sadd.s32 1, %s2253_s20   ;;  %s2754_s28 = sld [smem:[#allocation16_spill]] }
 0xc25   : > { %p21_p7 = scmp.ge.s32.totalorder %s24_s20, 4   ;;  %s2755_s15 = smov %s2237_s16 }
 0xc26   : > { %s2756_s16 = smov %s2241_s17  ;;  %s2757_s17 = smov %s2437_s14 }
 0xc27   : > { %s2758_s18 = smov %s2249_s19  ;;  %23 = sbr.rel (!%p21_p7) target bundleno = 12 (0xc), region = 102 }
 0xc2a   : > { %s2759_s19 = smov %s2754_s28 }
 0xc2e   :  { %1587 = vsyncpa [#allocation3], 1 }
 0xc2f   :  { %1589 = vsyncpa [#allocation3 + $0x1], 1 }
 0xc30   :  { %1590 = vsyncpa [#allocation6], 1 }
 0xc31   :  { %1592 = vsyncpa [#allocation6 + $0x1], 1 }
 0xc32   :  { %1593 = vsyncpa [#allocation9], 1 }
 0xc33   :  { %1594 = vsyncpa [#allocation4], 1 }
 0xc34   :  { %1596 = vsyncpa [#allocation4 + $0x1], 1 }

</bundles_post_ra>
